<compile_context>
chip_gen: v6e
topology: v6e:2x2x1
jax: 0.10.0
libtpu: 0.0.40
codegen_flags: <defaults>
</compile_context>

<pallas_src>
import functools

import jax
import jax.numpy as jnp
from jax import lax
from jax.experimental import pallas as pl
from jax.experimental.pallas import tpu as pltpu


TM = 128       # target-node tile (sublane axis)
MAX_TK = 512   # source-node tile upper bound (lane axis)


def _pick_tk(np_):
    for tk in (MAX_TK, 256, 128):
        if np_ % tk == 0:
            return tk
    return 128


# ----------------------------- Pallas kernels --------------------------------

def linear_kernel(x_ref, w_ref, b_ref, o_ref):
    """Row-tiled o = x @ W + b (feature dims whole; node rows pipelined)."""
    o_ref[...] = (
        jnp.dot(x_ref[...], w_ref[...], preferred_element_type=jnp.float32)
        + b_ref[...]
    ).astype(o_ref.dtype)


def gatv2_attn_kernel(occ_ref, mask_ref, s_r_ref, s_lt_ref, att_ref, bias_ref,
                      o_ref, m_ref, l_ref, acc_ref, *,
                      heads, channels, negative_slope,
                      apply_elu, apply_log_softmax):
    """One (target-tile, source-tile) step of GATv2 attention, all heads.

    Flash-style masked online softmax over source blocks, per-head f32
    accumulators in VMEM scratch, activation fused into the last-block
    epilogue. Empty adjacency blocks (occ == 0) are skipped entirely.
    """
    i = pl.program_id(0)
    k = pl.program_id(1)

    @pl.when(k == 0)
    def _init():
        m_ref[...] = jnp.full_like(m_ref, -1e30)
        l_ref[...] = jnp.zeros_like(l_ref)
        acc_ref[...] = jnp.zeros_like(acc_ref)

    @pl.when(occ_ref[i, k] > 0)
    def _compute():
        # int8 adjacency tile -> f32 additive bias, ONCE per (i, k) tile.
        mask_f = mask_ref[...].astype(jnp.float32)            # (TM, TK)
        neg_bias = jnp.where(mask_f > 0.0, 0.0, -jnp.inf)     # additive mask

        sr = s_r_ref[...]       # (TM, H*C)  target features
        slt = s_lt_ref[...]     # (H*C, TK)  source features, transposed
        att = att_ref[...]      # (1, H*C)

        for h in range(heads):
            base = h * channels
            # e[i,j] = sum_c a_c * leaky_relu(s_r[i,c] + s_l[j,c]) + mask_bias
            # channel-by-channel so every VPU op is a full lane-dense tile.
            e = neg_bias
            for c in range(channels):
                col = base + c
                z = sr[:, col:col + 1] + slt[col:col + 1, :]   # (TM, TK)
                z = jnp.maximum(z, negative_slope * z)         # leaky_relu
                e = e + att[:, col:col + 1] * z

            # online softmax (per head); masked entries are exactly exp(-inf)=0
            m_prev = m_ref[h]                                  # (TM, 1)
            m_new = jnp.maximum(m_prev, jnp.max(e, axis=1, keepdims=True))
            corr = jnp.exp(m_prev - m_new)
            p = jnp.exp(e - m_new)                             # (TM, TK)
            l_ref[h] = corr * l_ref[h] + jnp.sum(p, axis=1, keepdims=True)

            # acc += p @ s_l  (s_l transposed -> contract last dims, MXU "NT")
            pv = lax.dot_general(
                p.astype(jnp.bfloat16),
                slt[base:base + channels, :].astype(jnp.bfloat16),
                (((1,), (1,)), ((), ())),
                preferred_element_type=jnp.float32)            # (TM, C)
            acc_ref[h] = corr * acc_ref[h] + pv
            m_ref[h] = m_new

    @pl.when(k == pl.num_programs(1) - 1)
    def _finalize():
        outs = []
        for h in range(heads):
            l = l_ref[h]
            l_safe = jnp.where(l > 0.0, l, 1.0)   # padded / isolated rows
            outs.append(acc_ref[h] / l_safe)
        out = outs[0] if heads == 1 else jnp.concatenate(outs, axis=1)
        out = out + bias_ref[...]                 # (TM, H*C) lane-dense slab
        if apply_elu:
            out = jnp.where(out > 0.0, out, jnp.expm1(jnp.minimum(out, 0.0)))
        if apply_log_softmax:
            mx = jnp.max(out, axis=1, keepdims=True)
            s = out - mx
            out = s - jnp.log(jnp.sum(jnp.exp(s), axis=1, keepdims=True))
        o_ref[...] = out.astype(o_ref.dtype)


# ------------------------------ Wrappers --------------------------------------

def linear_rows(x, w, b):
    """x:(NP,Fin) @ w:(Fin,Fout) + b:(Fout,) with the node axis pipelined."""
    np_, f_in = x.shape
    f_out = w.shape[1]
    return pl.pallas_call(
        linear_kernel,
        out_shape=jax.ShapeDtypeStruct((np_, f_out), jnp.float32),
        grid=(np_ // TM,),
        in_specs=[
            pl.BlockSpec((TM, f_in), lambda i: (i, 0)),
            pl.BlockSpec((f_in, f_out), lambda i: (0, 0)),
            pl.BlockSpec((1, f_out), lambda i: (0, 0)),
        ],
        out_specs=pl.BlockSpec((TM, f_out), lambda i: (i, 0)),
        compiler_params=pltpu.CompilerParams(dimension_semantics=("parallel",)),
    )(x, w, b.reshape(1, f_out))


def gatv2_attention(occ, mask, s_r, s_lt, att, bias, *, heads, channels,
                    apply_elu, apply_log_softmax, negative_slope=0.2):
    np_, hc = s_r.shape
    tk = _pick_tk(np_)
    grid = (np_ // TM, np_ // tk)

    kernel = functools.partial(
        gatv2_attn_kernel,
        heads=heads, channels=channels, negative_slope=negative_slope,
        apply_elu=apply_elu, apply_log_softmax=apply_log_softmax)

    flops = int(heads * np_ * np_ * (7 * channels + 8))
    transcendentals = int(heads * np_ * np_)
    bytes_accessed = int(np_ * np_ * mask.dtype.itemsize        # mask, once
                         + (np_ // TM) * np_ * hc * 4           # s_l^T restream
                         + 2 * np_ * hc * 4)                    # s_r + out

    return pl.pallas_call(
        kernel,
        out_shape=jax.ShapeDtypeStruct((np_, hc), jnp.float32),
        grid_spec=pltpu.PrefetchScalarGridSpec(
            num_scalar_prefetch=1,                              # occupancy table
            grid=grid,
            in_specs=[
                pl.BlockSpec((TM, tk), lambda i, k, occ_t: (i, k)),   # mask
                pl.BlockSpec((TM, hc), lambda i, k, occ_t: (i, 0)),   # s_r
                pl.BlockSpec((hc, tk), lambda i, k, occ_t: (0, k)),   # s_l^T
                pl.BlockSpec((1, hc), lambda i, k, occ_t: (0, 0)),    # att
                pl.BlockSpec((1, hc), lambda i, k, occ_t: (0, 0)),    # bias
            ],
            out_specs=pl.BlockSpec((TM, hc), lambda i, k, occ_t: (i, 0)),
            scratch_shapes=[
                pltpu.VMEM((heads, TM, 1), jnp.float32),          # running max
                pltpu.VMEM((heads, TM, 1), jnp.float32),          # running denom
                pltpu.VMEM((heads, TM, channels), jnp.float32),   # accumulators
            ]),
        compiler_params=pltpu.CompilerParams(
            dimension_semantics=("parallel", "arbitrary"),
            vmem_limit_bytes=32 * 1024 * 1024),
        cost_estimate=pl.CostEstimate(
            flops=flops, transcendentals=transcendentals,
            bytes_accessed=bytes_accessed),
    )(occ, mask, s_r, s_lt, att, bias)


def gatv2_conv_layer(x, mask, occ, params, *, heads, apply_elu,
                     apply_log_softmax):
    """One GATv2Conv layer on padded node features x:(NP, Fin) -> (NP, H*C)."""
    if apply_log_softmax:
        assert heads == 1  # log_softmax over dim=1 only when output == classes
    hc = params["w_l"].shape[1]
    channels = hc // heads

    # Fused source/target projections: one matmul, lane-dense (2*H*C) output.
    w = jnp.concatenate([params["w_l"], params["w_r"]], axis=1)
    b = jnp.concatenate([params["b_l"], params["b_r"]], axis=0)
    proj = linear_rows(x, w, b)                 # (NP, 2*H*C)
    s_l, s_r = proj[:, :hc], proj[:, hc:]

    s_lt = jnp.transpose(s_l)                   # (H*C, NP) for lane-dense scores
    att = params["att"].reshape(1, hc)          # head-major (h*C + c)
    bias = params["bias"].reshape(1, hc)

    return gatv2_attention(occ, mask, s_r, s_lt, att, bias,
                           heads=heads, channels=channels,
                           apply_elu=apply_elu,
                           apply_log_softmax=apply_log_softmax)   # (NP, H*C)


def build_attention_mask(edge_index, num_nodes, padded_nodes):
    """int8 mask: mask[i, j] = 1 iff edge j->i exists or i == j (self-loop)."""
    src, dst = edge_index[0], edge_index[1]
    m = jnp.zeros((padded_nodes, padded_nodes), jnp.int8)
    m = m.at[dst, src].set(1)                    # message flows src -> dst
    idx = jnp.arange(num_nodes)
    m = m.at[idx, idx].set(1)                    # self-loops on real nodes
    return m


def build_block_occupancy(mask, tm, tk):
    """int32 (NP/tm, NP/tk) table: 1 iff the adjacency block has any edge."""
    nbi, nbk = mask.shape[0] // tm, mask.shape[1] // tk
    blocks = mask.reshape(nbi, tm, nbk, tk)
    return jnp.any(blocks != 0, axis=(1, 3)).astype(jnp.int32)


def gat_forward(dataset_name, x, edge_index, params1, params2, *, heads):
    """Eval-mode forward of the PyTorch GAT module (dropout = identity)."""
    n = x.shape[0]
    np_ = ((n + TM - 1) // TM) * TM              # pad nodes to tile multiple
    tk = _pick_tk(np_)
    x_pad = jnp.pad(x, ((0, np_ - n), (0, 0)))
    mask = build_attention_mask(edge_index, n, np_)
    occ = build_block_occupancy(mask, TM, tk)

    # x = F.dropout(x, p=0.8, training=False) -> identity in eval mode
    h = gatv2_conv_layer(x_pad, mask, occ, params1, heads=heads,
                         apply_elu=True, apply_log_softmax=False)
    # dropout identity again
    out = gatv2_conv_layer(h, mask, occ, params2, heads=1,
                           apply_elu=False,
                           apply_log_softmax=(dataset_name == "Flickr"))
    return out[:n]


# --------------------------------- Main ----------------------------------------

if __name__ == "__main__":
    key = jax.random.PRNGKey(0)
    keys = jax.random.split(key, 8)

    num_nodes = 200          # pads to 256 -> exercises multi-block online softmax
    num_edges = 800
    in_channels = 16
    hidden_channels = 8
    out_channels = 7
    heads = 8

    x = jax.random.normal(keys[0], (num_nodes, in_channels), dtype=jnp.float32)
    edge_index = jax.random.randint(keys[1], (2, num_edges), 0, num_nodes,
                                    dtype=jnp.int32)

    def glorot(k, shape):
        lim = (6.0 / (shape[0] + shape[1])) ** 0.5
        return jax.random.uniform(k, shape, minval=-lim, maxval=lim,
                                  dtype=jnp.float32)

    # conv1: GATv2Conv(in_channels, hidden_channels, heads=heads)
    params1 = dict(
        w_l=glorot(keys[2], (in_channels, heads * hidden_channels)),
        b_l=jnp.zeros((heads * hidden_channels,), jnp.float32),
        w_r=glorot(keys[3], (in_channels, heads * hidden_channels)),
        b_r=jnp.zeros((heads * hidden_channels,), jnp.float32),
        att=glorot(keys[4], (heads, hidden_channels)),
        bias=jnp.zeros((heads * hidden_channels,), jnp.float32),
    )
    # conv2: GATv2Conv(heads * hidden_channels, out_channels, heads=1)
    params2 = dict(
        w_l=glorot(keys[5], (heads * hidden_channels, out_channels)),
        b_l=jnp.zeros((out_channels,), jnp.float32),
        w_r=glorot(keys[6], (heads * hidden_channels, out_channels)),
        b_r=jnp.zeros((out_channels,), jnp.float32),
        att=glorot(keys[7], (1, out_channels)),
        bias=jnp.zeros((out_channels,), jnp.float32),
    )

    out = gat_forward("Flickr", x, edge_index, params1, params2, heads=heads)
    out = jax.block_until_ready(out)
    assert out.shape == (num_nodes, out_channels)
    assert bool(jnp.all(jnp.isfinite(out)))
    print("KERNEL_OK")
</pallas_src>

<mosaic_0001>
module attributes {stable_mosaic.version = 11 : i64} {
  func.func @linear_kernel(%arg0: i32, %arg1: memref<128x16xf32, #tpu.memory_space<vmem>>, %arg2: memref<16x128xf32, #tpu.memory_space<vmem>>, %arg3: memref<1x128xf32, #tpu.memory_space<vmem>>, %arg4: memref<128x128xf32, #tpu.memory_space<vmem>>) attributes {dimension_semantics = [#tpu.dimension_semantics<parallel>], iteration_bounds = array<i64: 2>, scalar_prefetch = 0 : i64, scratch_operands = 0 : i64, tpu.core_type = #tpu.core_type<tc>, window_params = [{transform_indices = @transform_0, window_bounds = array<i64: 128, 16>}, {pipeline_mode = #tpu.pipeline_mode<synchronous>, transform_indices = @transform_1, window_bounds = array<i64: 16, 128>}, {pipeline_mode = #tpu.pipeline_mode<synchronous>, transform_indices = @transform_2, window_bounds = array<i64: 1, 128>}, {transform_indices = @transform_3, window_bounds = array<i64: 128, 128>}]} {
    %c0 = arith.constant 0 : index
    %c0_0 = arith.constant 0 : index
    %0 = vector.load %arg1[%c0, %c0_0] : memref<128x16xf32, #tpu.memory_space<vmem>>, vector<128x16xf32>
    %c0_1 = arith.constant 0 : index
    %c0_2 = arith.constant 0 : index
    %1 = vector.load %arg2[%c0_1, %c0_2] : memref<16x128xf32, #tpu.memory_space<vmem>>, vector<16x128xf32>
    %cst = arith.constant dense<0.000000e+00> : vector<128x128xf32>
    %2 = tpu.matmul %0, %1, %cst {dimension_numbers = #tpu.dot_dimension_numbers<[1], [0], [0], [1], [0, 0, 1, 1], [], []>} : vector<128x16xf32>, vector<16x128xf32>, vector<128x128xf32> -> vector<128x128xf32>
    %c0_3 = arith.constant 0 : index
    %c0_4 = arith.constant 0 : index
    %3 = vector.load %arg3[%c0_3, %c0_4] : memref<1x128xf32, #tpu.memory_space<vmem>>, vector<1x128xf32>
    %4 = vector.broadcast %3 : vector<1x128xf32> to vector<128x128xf32>
    %5 = arith.addf %2, %4 : vector<128x128xf32>
    %c0_5 = arith.constant 0 : index
    %c0_6 = arith.constant 0 : index
    %6 = vector.load %arg4[%c0_5, %c0_6] : memref<128x128xf32, #tpu.memory_space<vmem>>, vector<128x128xf32>
    tpu.vector_store %arg4[%c0_5, %c0_6], %5 {strides = array<i32>} : memref<128x128xf32, #tpu.memory_space<vmem>>, vector<128x128xf32>,
    return
  }
  func.func @transform_0(%arg0: i32) -> (i32, i32) {
    %c0_i32 = arith.constant 0 : i32
    %c0_i32_0 = arith.constant 0 : i32
    return %arg0, %c0_i32 : i32, i32
  }
  func.func @transform_1(%arg0: i32) -> (i32, i32) {
    %c0_i32 = arith.constant 0 : i32
    %c0_i32_0 = arith.constant 0 : i32
    %c0_i32_1 = arith.constant 0 : i32
    return %c0_i32, %c0_i32_0 : i32, i32
  }
  func.func @transform_2(%arg0: i32) -> (i32, i32) {
    %c0_i32 = arith.constant 0 : i32
    %c0_i32_0 = arith.constant 0 : i32
    %c0_i32_1 = arith.constant 0 : i32
    return %c0_i32, %c0_i32_0 : i32, i32
  }
  func.func @transform_3(%arg0: i32) -> (i32, i32) {
    %c0_i32 = arith.constant 0 : i32
    %c0_i32_0 = arith.constant 0 : i32
    return %arg0, %c0_i32 : i32, i32
  }
}

</mosaic_0001>

<bundles_post_ra>
// kernel: tpu_custom_call.1
= control target key start
LH: loop header
LB: loop body
LE: loop exit
PB: predicated region body
PF: predicated region fallthrough
CT: control target
= control target key end

     0   :  { %8 = vsyncpa [#allocation3], 0  ;;  %s838_s0 = inlined_call_operand.vmem [shape: f32[256,16], index: 0, kind: input, shape index: {}]   ;;  %s839_s1 = inlined_call_operand.vmem [shape: f32[16,128], index: 1, kind: input, shape index: {}]   ;;  %s840_s2 = inlined_call_operand.vmem [shape: f32[1,128], index: 2, kind: input, shape index: {}]   ;;  %s841_s3 = inlined_call_operand.hbm [shape: f32[256,128], index: 3, kind: output, shape index: {}]  }
   0x1   :  { %10 = vsyncpa [#allocation3 + $0x1], 0  ;;  %s689_s12 = smov 0   ;;  %s691_s13 = smov 0  }
   0x2   :  { %s693_s14 = smov 0   ;;  %s695_s15 = smov 0  }
   0x3 LB: > { %s710_s16 = sadd.s32 4294967295, %s664_s15   ;;  %s483_s17 = sadd.s32 4294967294, %s664_s15   ;;  %s664_s15 = sphi %s695_s15, %s847_s15   ;;  %s660_s14 = sphi %s693_s14, %s846_s14   ;;  %s656_s13 = sphi %s691_s13, %s845_s13   ;;  %s652_s12 = sphi %s689_s12, %s844_s12  }
   0x4   : > { %s714_s18 = sadd.s32 1, %s664_s15   ;;  %s91_s19 = sadd.s32 1, %s660_s14 }
   0x5   : > { %s88_s20 = ssub.s32 %s664_s15, %s714_s18  ;;  %p101_p0 = scmp.ne.s32.totalorder %s660_s14, %s656_s13 }
   0x6   : > { %p89_p1 = scmp.eq.s32.totalorder %s88_s20, 0  ;;  %p102_p2 = scmp.eq.s32.totalorder %s710_s16, 1 }
   0x7   : > { %p107_p3 = scmp.ne.s32.totalorder %s656_s13, %s652_s12  ;;  %p108_p4 = scmp.eq.s32.totalorder %s483_s17, 1 }
   0x8   : > { %s725_s21 = scalar_select %p89_p1, %s660_s14, %s91_s19  }
   0x9   : > { %p727_p5 = por %p102_p2, %p101_p0  ;;  %p731_p6 = por %p108_p4, %p107_p3 }
   0xa   : > { %p486_p7 = scmp.ge.s32.totalorder %s664_s15, 1  ;;  %p141_p8 = scmp.lt.s32.totalorder %s664_s15, 3 }
   0xc   : > { %p142_p9 = pnand %p486_p7, %p141_p8 }
   0xd   : > { %s488_s28 = sshll.u32 (!%p142_p9), %s710_s16, 4  ;;  %s162_s6 = sand.u32 (!%p142_p9), 1, %s656_s13  }
   0xe   : > { %145 = sbr.rel (%p142_p9) target bundleno = 248 (0xf8), region = 32  ;;  %p166_p10 = scmp.lt.s32.totalorder (!%p142_p9), %s488_s28, 31 }
   0xf   : > { %s487_s7 = sshll.u32 (!%p142_p9), %s162_s6, 7  ;;  %s512_s11 = sshll.u32 (!%p142_p9), %s710_s16, 11 }
  0x10   : > { %s769_s10 = scalar_lea.vmem (!%p142_p9), [#allocation2], %s487_s7  ;;  %s788_s24 = scalar_lea.hbm (!%p142_p9), %s841_s3, %s512_s11 }
  0x11   : > { %s421_s17 = sshll.u32 (!%p142_p9), %s769_s10, 4  ;;  %s798_s16 = scalar_lea.sflag (!%p142_p9), [#allocation3], %s162_s6  ;;  %s790_s17 = int_to_ptr.vmem [resolvable:$true] %s421_s17 }
  0x12   : > { %s604_s25 = scalar_lea.vmem (!%p142_p9), %s790_s17, 2048  ;;  %s666_s26 = smov (!%p142_p9), [#allocation2]  }
  0x13   : > { %v189_v0 = vld [vmem:[%s839_s1 + $0x8] sm:$0xff]  ;;  %v188_v1 = vld [vmem:[%s839_s1] sm:$0xff]  ;;  %s849_s28 = smov (!%p166_p10, %s488_s28), 31  ;;  %vm197_vm0 = vcmask 130048   ;;  %p605_p11 = scmp.ne.s32.totalorder %s790_s17, %s604_s25 }
  0x14   : > { %531 = vmatprep.subr.mxu0 %v189_v0  ;;  %559 = vmatprep.subr.mxu1 %v189_v0  ;;  %s489_s29 = sshll.u32 %s849_s28, 3  ;;  %v490_v18 = vld [vmem:[%s840_s2] ss:$0 sm:$0xff]  ;;  %s608_s27 = sshll.u32 %s666_s26, 4  ;;  %s609_s27 = int_to_ptr.vmem [resolvable:$false] %s608_s27 }
  0x15   : > { %532 = vmatpush3.msra.mxu0 %v189_v0  ;;  %561 = vmatpush3.msra.mxu1 %v189_v0  ;;  %s169_s5 = scalar_lea.vmem %s838_s0, %s489_s29  ;;  %p606_p12 = pnand %p605_p11, %p727_p5 }
  0x16   : > { %533 = vmatprep.subr.mxu0 %v188_v1  ;;  %560 = vmatprep.subr.mxu1 %v188_v1  ;;  %v172_v2 = vld [vmem:[%s169_s5] sm:$0xff]  ;;  %v173_v4 = vld [vmem:[%s169_s5 + $0x8] sm:$0xff]  ;;  %v174_v6 = vld [vmem:[%s169_s5 + $0x10] sm:$0xff]  ;;  %s610_s28 = scalar_lea.vmem %s609_s27, 4096  ;;  %p611_p0 = scmp.lt.s32.totalorder %s790_s17, %s609_s27 }
  0x17   : > { %534 = vmatpush3.msra.mxu0 %v188_v1  ;;  %562 = vmatpush3.msra.mxu1 %v188_v1  ;;  %v180_v3 = vld [vmem:[%s169_s5 + $0x40] sm:$0xff]  ;;  %v181_v5 = vld [vmem:[%s169_s5 + $0x48] sm:$0xff]  ;;  %v182_v7 = vld [vmem:[%s169_s5 + $0x50] sm:$0xff]  ;;  %p607_p13 = pneg %p606_p12  ;;  %p612_p1 = scmp.lt.s32.totalorder %s610_s28, %s604_s25 }
  0x18   : > { %535 = vmatprep.mubr.msk.f32.mxu0 %vm197_vm0, %v172_v2  ;;  %547 = vmatprep.mubr.msk.f32.mxu1 %vm197_vm0, %v180_v3  ;;  %v175_v8 = vld [vmem:[%s169_s5 + $0x18] sm:$0xff]  ;;  %v176_v10 = vld [vmem:[%s169_s5 + $0x20] sm:$0xff]  ;;  %v177_v12 = vld [vmem:[%s169_s5 + $0x28] sm:$0xff] }
  0x19   : > { %536 = vmatmul.mubr.msk.f32.vlgmr.msra.gmra.mxu0 %vm197_vm0, %v173_v4  ;;  %548 = vmatmul.mubr.msk.f32.vlgmr.msra.gmra.mxu1 %vm197_vm0, %v181_v5  ;;  %v183_v9 = vld [vmem:[%s169_s5 + $0x58] sm:$0xff]  ;;  %v184_v11 = vld [vmem:[%s169_s5 + $0x60] sm:$0xff]  ;;  %v185_v13 = vld [vmem:[%s169_s5 + $0x68] sm:$0xff]  ;;  %p613_p2 = por %p612_p1, %p611_p0 }
  0x1a   : > { %538 = vmatprep.mubr.msk.f32.mxu0 %vm197_vm0, %v174_v6  ;;  %550 = vmatprep.mubr.msk.f32.mxu1 %vm197_vm0, %v182_v7  ;;  %v178_v14 = vld [vmem:[%s169_s5 + $0x30] sm:$0xff]  ;;  %v179_v16 = vld [vmem:[%s169_s5 + $0x38] sm:$0xff] }
  0x1b   : > { %v186_v15 = vld [vmem:[%s169_s5 + $0x70] sm:$0xff]  ;;  %v187_v17 = vld [vmem:[%s169_s5 + $0x78] sm:$0xff]  ;;  %p614_p3 = pnand %p613_p2, %p607_p13 }
  0x1d   : > { %539 = vmatmul.mubr.msk.f32.gmra.mxu0 %vm197_vm0, %v175_v8  ;;  %551 = vmatmul.mubr.msk.f32.gmra.mxu1 %vm197_vm0, %v183_v9 }
  0x1e   : > { %541 = vmatprep.mubr.msk.f32.mxu0 %vm197_vm0, %v176_v10  ;;  %553 = vmatprep.mubr.msk.f32.mxu1 %vm197_vm0, %v184_v11 }
  0x21   : > { %542 = vmatmul.mubr.msk.f32.gmra.mxu0 %vm197_vm0, %v177_v12  ;;  %554 = vmatmul.mubr.msk.f32.gmra.mxu1 %vm197_vm0, %v185_v13 }
  0x22   : > { %544 = vmatprep.mubr.msk.f32.mxu0 %vm197_vm0, %v178_v14  ;;  %556 = vmatprep.mubr.msk.f32.mxu1 %vm197_vm0, %v186_v15 }
  0x25   : > { %545 = vmatmul.mubr.msk.f32.gmra.mxu0 %vm197_vm0, %v179_v16  ;;  %557 = vmatmul.mubr.msk.f32.gmra.mxu1 %vm197_vm0, %v187_v17 }
  0xd9   : > { %v537_v19 = vpop.f32.mrf.mxu0  ;;  %v549_v20 = vpop.f32.mrf.mxu1 }
  0xda   : > { %v318_v21 = vadd.f32 %v537_v19, %v490_v18  ;;  %v358_v22 = vadd.f32 %v549_v20, %v490_v18 }
  0xdb   : > { %v312_v23 = vpop.f32.mrf.mxu0  ;;  %v352_v24 = vpop.f32.mrf.mxu1 }
  0xdc   : > { %392 = vst [vmem:[%s769_s10 + $0x8] sm:$0xff] %v318_v21  ;;  %400 = vst [vmem:[%s769_s10 + $0x48] sm:$0xff] %v358_v22  ;;  %v313_v25 = vadd.f32 %v490_v18, %v312_v23  ;;  %v353_v26 = vadd.f32 %v490_v18, %v352_v24 }
  0xdd   : > { %v540_v27 = vpop.f32.mrf.mxu0  ;;  %v552_v28 = vpop.f32.mrf.mxu1 }
  0xde   : > { %391 = vst [vmem:[%s769_s10] sm:$0xff] %v313_v25  ;;  %399 = vst [vmem:[%s769_s10 + $0x40] sm:$0xff] %v353_v26  ;;  %v328_v29 = vadd.f32 %v540_v27, %v490_v18  ;;  %v368_v30 = vadd.f32 %v552_v28, %v490_v18 }
  0xdf   : > { %v322_v31 = vpop.f32.mrf.mxu0  ;;  %v362_v32 = vpop.f32.mrf.mxu1 }
  0xe0   : > { %394 = vst [vmem:[%s769_s10 + $0x18] sm:$0xff] %v328_v29  ;;  %402 = vst [vmem:[%s769_s10 + $0x58] sm:$0xff] %v368_v30  ;;  %v323_v33 = vadd.f32 %v490_v18, %v322_v31  ;;  %v363_v34 = vadd.f32 %v490_v18, %v362_v32 }
  0xe1   : > { %v543_v35 = vpop.f32.mrf.mxu0  ;;  %v555_v36 = vpop.f32.mrf.mxu1 }
  0xe2   : > { %393 = vst [vmem:[%s769_s10 + $0x10] sm:$0xff] %v323_v33  ;;  %401 = vst [vmem:[%s769_s10 + $0x50] sm:$0xff] %v363_v34  ;;  %v338_v37 = vadd.f32 %v543_v35, %v490_v18  ;;  %v378_v38 = vadd.f32 %v555_v36, %v490_v18 }
  0xe3   : > { %v332_v39 = vpop.f32.mrf.mxu0  ;;  %v372_v40 = vpop.f32.mrf.mxu1 }
  0xe4   : > { %396 = vst [vmem:[%s769_s10 + $0x28] sm:$0xff] %v338_v37  ;;  %404 = vst [vmem:[%s769_s10 + $0x68] sm:$0xff] %v378_v38  ;;  %v333_v41 = vadd.f32 %v490_v18, %v332_v39  ;;  %v373_v42 = vadd.f32 %v490_v18, %v372_v40 }
  0xe5   : > { %v546_v43 = vpop.f32.mrf.mxu0  ;;  %v558_v44 = vpop.f32.mrf.mxu1 }
  0xe6   : > { %395 = vst [vmem:[%s769_s10 + $0x20] sm:$0xff] %v333_v41  ;;  %403 = vst [vmem:[%s769_s10 + $0x60] sm:$0xff] %v373_v42  ;;  %v348_v45 = vadd.f32 %v546_v43, %v490_v18  ;;  %v388_v46 = vadd.f32 %v558_v44, %v490_v18 }
  0xe7   : > { %v342_v47 = vpop.f32.mrf.mxu0  ;;  %v382_v48 = vpop.f32.mrf.mxu1 }
  0xe8   : > { %398 = vst [vmem:[%s769_s10 + $0x38] sm:$0xff] %v348_v45  ;;  %406 = vst [vmem:[%s769_s10 + $0x78] sm:$0xff] %v388_v46  ;;  %v343_v49 = vadd.f32 %v490_v18, %v342_v47  ;;  %v383_v50 = vadd.f32 %v490_v18, %v382_v48 }
  0xea   : > { %397 = vst [vmem:[%s769_s10 + $0x30] sm:$0xff] %v343_v49  ;;  %405 = vst [vmem:[%s769_s10 + $0x70] sm:$0xff] %v383_v50 }
  0xeb   : > { %617 = shalt.err (!%p614_p3)
}
  0xec   : > { %s618_s29 = scalar_lea.hbm %s788_s24, 2048  ;;  %s622_s5 = scalar_lea.hbm %s841_s3, 4096 }
  0xed   : > { %p619_p4 = scmp.ne.s32.totalorder %s788_s24, %s618_s29  ;;  %p623_p9 = scmp.lt.s32.totalorder %s788_s24, %s841_s3 }
  0xee   : > { %p624_p10 = scmp.lt.s32.totalorder %s622_s5, %s618_s29 }
  0xef   : > { %p620_p7 = pnand %p619_p4, %p727_p5 }
  0xf0   : > { %p625_p11 = por %p624_p10, %p623_p9 }
  0xf1   : > { %p621_p8 = pneg %p620_p7 }
  0xf3   : > { %p626_p12 = pnand %p625_p11, %p621_p8 }
  0xf5   : > { %629 = shalt.err (!%p626_p12)
}
  0xf6   : > { %s667_s8 = smov 128   ;;  %s668_s9 = smov 8  }
  0xf7   : > { %563 = dma.vmem_to_hbm [thread:$0]  (%p727_p5), %s790_s17, 2048, %s788_s24, %s798_s16, %s667_s8, %s667_s8, %s668_s9  }
  0xf8 PF: > { %p569_p13 = scmp.ge.s32.totalorder %s664_s15, 2  ;;  %s436_s10 = sand.u32 1, %s652_s12  }
  0xf9   : > { %s437_s11 = scalar_lea.sflag [#allocation3], %s436_s10 }
  0xfa   : > { %p566_p0 = pnand %p569_p13, %p731_p6 }
  0xfc   : > { %p567_p1 = pneg %p566_p0 }
  0xfe   : > { %647 = dma.done.wait (%p567_p1), %s437_s11, 2048  }
  0xff   : > { %649 = vsyncadd (%p567_p1), %s437_s11, 4294965248  ;;  %p13_p2 = scmp.ge.s32.totalorder %s714_s18, 4   ;;  %s844_s12 = smov %s656_s13 }
 0x100   : > { %s845_s13 = smov %s660_s14  ;;  %s846_s14 = smov %s725_s21 }
 0x101   : > { %s847_s15 = smov %s714_s18  ;;  %15 = sbr.rel (!%p13_p2) target bundleno = 3 (0x3), region = 67 }
 0x106   :  { %442 = vsyncpa [#allocation3], 1 }
 0x107   :  { %444 = vsyncpa [#allocation3 + $0x1], 1 }

</bundles_post_ra>
